<compile_context>
chip_gen: v7x
topology: tpu7x:2x2x1
jax: 0.10.0
libtpu: 0.0.40
codegen_flags: <defaults>
</compile_context>

<pallas_src>
import functools

import jax
import jax.numpy as jnp
from jax.experimental import pallas as pl
from jax.experimental.pallas import tpu as pltpu


def _round_up(x: int, m: int) -> int:
    return ((x + m - 1) // m) * m


def _normed_matmul_kernel(x_ref, w_ref, inv_xn_ref, inv_wn_ref, o_ref, acc_ref):
    """Tiled matmul with resident f32 accumulator; norms applied at finalize."""
    k = pl.program_id(2)

    @pl.when(k == 0)
    def _init():
        acc_ref[...] = jnp.zeros_like(acc_ref)

    # MXU matmul in the input dtype (bf16 or f32), f32 accumulation.
    acc_ref[...] += jnp.dot(
        x_ref[...], w_ref[...], preferred_element_type=jnp.float32
    )

    @pl.when(k == pl.num_programs(2) - 1)
    def _finalize():
        # Scale the (tm, tn) output tile by the precomputed full-K inverse
        # row norms of x and column norms of w:  (x @ w) * inv_xn * inv_wn.
        o_ref[...] = (
            acc_ref[...] * inv_xn_ref[...] * inv_wn_ref[...]
        ).astype(o_ref.dtype)


@functools.partial(jax.jit, static_argnames=("tm", "tn", "tk"))
def normed_linear(x: jax.Array, weight: jax.Array,
                  *, tm: int = 256, tn: int = 256, tk: int = 512) -> jax.Array:
    """cosine = normalize(x, dim=1) @ normalize(weight, dim=0)."""
    m, k = x.shape
    k_w, n = weight.shape
    assert k == k_w, "in_features mismatch"

    eps = jnp.float32(1e-12)  # matches torch.nn.functional.normalize default

    # Full-K inverse norms (must be computed over the FULL reduction axis;
    # cheap mem-bound reductions done once, outside the tiled matmul loop).
    x_f32 = x.astype(jnp.float32)
    w_f32 = weight.astype(jnp.float32)
    inv_xn = 1.0 / jnp.maximum(
        jnp.sqrt(jnp.sum(x_f32 * x_f32, axis=1, keepdims=True)), eps
    )  # (m, 1)
    inv_wn = 1.0 / jnp.maximum(
        jnp.sqrt(jnp.sum(w_f32 * w_f32, axis=0, keepdims=True)), eps
    )  # (1, n)

    # Clamp tile sizes to the (alignment-padded) problem size.
    tm = min(tm, _round_up(m, 8))
    tn = min(tn, _round_up(n, 128))   # lane-dense output tiles
    tk = min(tk, _round_up(k, 128))

    m_pad = _round_up(m, tm)
    n_pad = _round_up(n, tn)
    k_pad = _round_up(k, tk)

    # Zero padding: padded K slots contribute 0 to the dot product; padded
    # M rows / N cols are sliced off at the end (their inv-norms are 0).
    x_p = jnp.pad(x, ((0, m_pad - m), (0, k_pad - k)))
    w_p = jnp.pad(weight, ((0, k_pad - k), (0, n_pad - n)))
    inv_xn_p = jnp.pad(inv_xn, ((0, m_pad - m), (0, 0)))
    inv_wn_p = jnp.pad(inv_wn, ((0, 0), (0, n_pad - n)))

    grid = (m_pad // tm, n_pad // tn, k_pad // tk)

    flops = 2 * m_pad * n_pad * k_pad
    bytes_accessed = (
        x_p.size * x_p.dtype.itemsize
        + w_p.size * w_p.dtype.itemsize
        + m_pad * n_pad * 4
        + inv_xn_p.size * 4
        + inv_wn_p.size * 4
    )

    out = pl.pallas_call(
        _normed_matmul_kernel,
        out_shape=jax.ShapeDtypeStruct((m_pad, n_pad), jnp.float32),
        grid_spec=pltpu.PrefetchScalarGridSpec(
            num_scalar_prefetch=0,
            grid=grid,
            in_specs=[
                pl.BlockSpec((tm, tk), lambda i, j, kk: (i, kk)),   # x tile
                pl.BlockSpec((tk, tn), lambda i, j, kk: (kk, j)),   # w tile
                pl.BlockSpec((tm, 1), lambda i, j, kk: (i, 0)),     # inv row norms
                pl.BlockSpec((1, tn), lambda i, j, kk: (0, j)),     # inv col norms
            ],
            out_specs=pl.BlockSpec((tm, tn), lambda i, j, kk: (i, j)),
            scratch_shapes=[pltpu.VMEM((tm, tn), jnp.float32)],
        ),
        compiler_params=pltpu.CompilerParams(
            dimension_semantics=("parallel", "parallel", "arbitrary"),
            vmem_limit_bytes=48 * 1024 * 1024,
        ),
        cost_estimate=pl.CostEstimate(
            flops=flops, transcendentals=0, bytes_accessed=bytes_accessed
        ),
    )(x_p, w_p, inv_xn_p, inv_wn_p)

    return out[:m, :n]


def init_normed_linear_weight(key, in_features, out_features):
    """Replicates: Tensor(in,out).uniform_(-1,1).renorm_(2, 1, 1e-5).mul_(1e5)."""
    w = jax.random.uniform(
        key, (in_features, out_features), minval=-1.0, maxval=1.0,
        dtype=jnp.float32,
    )
    # renorm_(p=2, dim=1, maxnorm=1e-5): each column's L2 norm clamped to <=1e-5,
    # then scaled by 1e5 -> each column has L2 norm ~= 1.
    col_norm = jnp.sqrt(jnp.sum(w * w, axis=0, keepdims=True))
    scale = jnp.where(col_norm > 1e-5, 1e-5 / (col_norm + 1e-7), 1.0)
    return w * scale * 1e5


def normed_linear_ref(x, w):
    """Pure-JAX reference (torch F.normalize semantics)."""
    eps = 1e-12
    xn = x / jnp.maximum(jnp.sqrt(jnp.sum(x * x, axis=1, keepdims=True)), eps)
    wn = w / jnp.maximum(jnp.sqrt(jnp.sum(w * w, axis=0, keepdims=True)), eps)
    return xn @ wn


if __name__ == "__main__":
    key = jax.random.PRNGKey(0)
    k_x, k_w = jax.random.split(key)

    batch = 8
    in_features = 32
    out_features = 16

    x = jax.random.normal(k_x, (batch, in_features), dtype=jnp.float32)
    weight = init_normed_linear_weight(k_w, in_features, out_features)

    out = normed_linear(x, weight)
    out = jax.block_until_ready(out)

    ref = normed_linear_ref(x, weight)
    assert out.shape == (batch, out_features)
    assert jnp.allclose(out, ref, atol=1e-5, rtol=1e-5), "mismatch vs reference"

    print("KERNEL_OK")
</pallas_src>

<mosaic_0001>
module attributes {stable_mosaic.version = 11 : i64} {
  func.func @_normed_matmul_kernel(%arg0: i32, %arg1: i32, %arg2: i32, %arg3: memref<8x128xf32, #tpu.memory_space<vmem>>, %arg4: memref<128x128xf32, #tpu.memory_space<vmem>>, %arg5: memref<8x1xf32, #tpu.memory_space<vmem>>, %arg6: memref<1x128xf32, #tpu.memory_space<vmem>>, %arg7: memref<8x128xf32, #tpu.memory_space<vmem>>, %arg8: memref<8x128xf32, #tpu.memory_space<vmem>>) attributes {dimension_semantics = [#tpu.dimension_semantics<parallel>, #tpu.dimension_semantics<parallel>, #tpu.dimension_semantics<arbitrary>], iteration_bounds = array<i64: 1, 1, 1>, scalar_prefetch = 0 : i64, scratch_operands = 1 : i64, tpu.core_type = #tpu.core_type<tc>, window_params = [{transform_indices = @transform_0, window_bounds = array<i64: 8, 128>}, {transform_indices = @transform_1, window_bounds = array<i64: 128, 128>}, {transform_indices = @transform_2, window_bounds = array<i64: 8, 1>}, {transform_indices = @transform_3, window_bounds = array<i64: 1, 128>}, {transform_indices = @transform_4, window_bounds = array<i64: 8, 128>}]} {
    %c0_i32 = arith.constant 0 : i32
    %0 = arith.cmpi eq, %arg2, %c0_i32 : i32
    %1 = arith.extui %0 : i1 to i32
    %c0_i32_0 = arith.constant 0 : i32
    %2 = arith.cmpi ne, %1, %c0_i32_0 : i32
    scf.if %2 {
      %cst_10 = arith.constant 0.000000e+00 : f32
      %12 = vector.broadcast %cst_10 : f32 to vector<8x128xf32>
      %c0_11 = arith.constant 0 : index
      %c0_12 = arith.constant 0 : index
      %13 = vector.load %arg8[%c0_11, %c0_12] : memref<8x128xf32, #tpu.memory_space<vmem>>, vector<8x128xf32>
      tpu.vector_store %arg8[%c0_11, %c0_12], %12 {strides = array<i32>} : memref<8x128xf32, #tpu.memory_space<vmem>>, vector<8x128xf32>,
    } else {
    }
    %c0 = arith.constant 0 : index
    %c0_1 = arith.constant 0 : index
    %3 = vector.load %arg8[%c0, %c0_1] : memref<8x128xf32, #tpu.memory_space<vmem>>, vector<8x128xf32>
    %c0_2 = arith.constant 0 : index
    %c0_3 = arith.constant 0 : index
    %4 = vector.load %arg3[%c0_2, %c0_3] : memref<8x128xf32, #tpu.memory_space<vmem>>, vector<8x128xf32>
    %c0_4 = arith.constant 0 : index
    %c0_5 = arith.constant 0 : index
    %5 = vector.load %arg4[%c0_4, %c0_5] : memref<128x128xf32, #tpu.memory_space<vmem>>, vector<128x128xf32>
    %cst = arith.constant dense<0.000000e+00> : vector<8x128xf32>
    %6 = tpu.matmul %4, %5, %cst {dimension_numbers = #tpu.dot_dimension_numbers<[1], [0], [0], [1], [0, 0, 1, 1], [], []>} : vector<8x128xf32>, vector<128x128xf32>, vector<8x128xf32> -> vector<8x128xf32>
    %7 = arith.addf %3, %6 : vector<8x128xf32>
    %c0_6 = arith.constant 0 : index
    %c0_7 = arith.constant 0 : index
    %8 = vector.load %arg8[%c0_6, %c0_7] : memref<8x128xf32, #tpu.memory_space<vmem>>, vector<8x128xf32>
    tpu.vector_store %arg8[%c0_6, %c0_7], %7 {strides = array<i32>} : memref<8x128xf32, #tpu.memory_space<vmem>>, vector<8x128xf32>,
    %c0_i32_8 = arith.constant 0 : i32
    %9 = arith.cmpi eq, %arg2, %c0_i32_8 : i32
    %10 = arith.extui %9 : i1 to i32
    %c0_i32_9 = arith.constant 0 : i32
    %11 = arith.cmpi ne, %10, %c0_i32_9 : i32
    scf.if %11 {
      %c0_10 = arith.constant 0 : index
      %c0_11 = arith.constant 0 : index
      %12 = vector.load %arg8[%c0_10, %c0_11] : memref<8x128xf32, #tpu.memory_space<vmem>>, vector<8x128xf32>
      %c0_12 = arith.constant 0 : index
      %c0_13 = arith.constant 0 : index
      %13 = vector.load %arg5[%c0_12, %c0_13] : memref<8x1xf32, #tpu.memory_space<vmem>>, vector<8x1xf32>
      %14 = vector.broadcast %13 : vector<8x1xf32> to vector<8x128xf32>
      %15 = arith.mulf %12, %14 : vector<8x128xf32>
      %c0_14 = arith.constant 0 : index
      %c0_15 = arith.constant 0 : index
      %16 = vector.load %arg6[%c0_14, %c0_15] : memref<1x128xf32, #tpu.memory_space<vmem>>, vector<1x128xf32>
      %17 = vector.broadcast %16 : vector<1x128xf32> to vector<8x128xf32>
      %18 = arith.mulf %15, %17 : vector<8x128xf32>
      %c0_16 = arith.constant 0 : index
      %c0_17 = arith.constant 0 : index
      %19 = vector.load %arg7[%c0_16, %c0_17] : memref<8x128xf32, #tpu.memory_space<vmem>>, vector<8x128xf32>
      tpu.vector_store %arg7[%c0_16, %c0_17], %18 {strides = array<i32>} : memref<8x128xf32, #tpu.memory_space<vmem>>, vector<8x128xf32>,
    } else {
    }
    return
  }
  func.func @transform_0(%arg0: i32, %arg1: i32, %arg2: i32) -> (i32, i32) {
    %c0_i32 = arith.constant 0 : i32
    return %arg0, %arg2 : i32, i32
  }
  func.func @transform_1(%arg0: i32, %arg1: i32, %arg2: i32) -> (i32, i32) {
    %c0_i32 = arith.constant 0 : i32
    return %arg2, %arg1 : i32, i32
  }
  func.func @transform_2(%arg0: i32, %arg1: i32, %arg2: i32) -> (i32, i32) {
    %c0_i32 = arith.constant 0 : i32
    %c0_i32_0 = arith.constant 0 : i32
    return %arg0, %c0_i32 : i32, i32
  }
  func.func @transform_3(%arg0: i32, %arg1: i32, %arg2: i32) -> (i32, i32) {
    %c0_i32 = arith.constant 0 : i32
    %c0_i32_0 = arith.constant 0 : i32
    return %c0_i32, %arg1 : i32, i32
  }
  func.func @transform_4(%arg0: i32, %arg1: i32, %arg2: i32) -> (i32, i32) {
    %c0_i32 = arith.constant 0 : i32
    return %arg0, %arg1 : i32, i32
  }
}

</mosaic_0001>

<bundles_post_ra>
// kernel: normed_linear.1
= control target key start
LH: loop header
LB: loop body
LE: loop exit
PB: predicated region body
PF: predicated region fallthrough
CT: control target
= control target key end

     0   :  { %v254_v3 = vmov 0.0|0.0   ;;  %vm255_vm0 = vmmov 0   ;;  %v256_v6 = vmov 0.0   ;;  %v257_v7 = vmov 0   ;;  %s353_s0 = inlined_call_operand.vmem [shape: f32[8,128], index: 0, kind: input, shape index: {}]   ;;  %s354_s1 = inlined_call_operand.vmem [shape: f32[128,128], index: 1, kind: input, shape index: {}]   ;;  %s355_s2 = inlined_call_operand.vmem [shape: f32[8,1], index: 2, kind: input, shape index: {}]   ;;  %s356_s3 = inlined_call_operand.vmem [shape: f32[1,128], index: 3, kind: input, shape index: {}]   ;;  %s357_s4 = inlined_call_operand.hbm [shape: f32[8,128], index: 4, kind: output, shape index: {}]  }
   0x1   :  { %v25_v0 = vld [vmem:[%s354_s1] sm:$0xff]  ;;  %v26_v1 = vld [vmem:[%s354_s1 + $0x8] sm:$0xff]  ;;  %v27_v2 = vld [vmem:[%s354_s1 + $0x10] sm:$0xff]  ;;  %200 = vmatprep.subr.bf16.mxu0 %v254_v3  ;;  %197 = vmatprep.mubr.msk.f32.mxu0 %vm255_vm0, %v256_v6 }
   0x2   :  { %v201_v4 = vpack.c.bf16 %v26_v1, %v25_v0  ;;  %v28_v5 = vld [vmem:[%s354_s1 + $0x18] sm:$0xff]  ;;  %229 = vset.pattern.permute.xlu0 %v257_v7  ;;  %v29_v9 = vld [vmem:[%s354_s1 + $0x20] sm:$0xff]  ;;  %v30_v10 = vld [vmem:[%s354_s1 + $0x28] sm:$0xff] }
   0x3   :  { %v204_v8 = vpack.c.bf16 %v28_v5, %v27_v2  ;;  %v117_v11 = vld [vmem:[%s355_s2] sm:$0xff] }
   0x4   :  { %202 = vmatpush3.bf16.msra.mxu0 %v201_v4  ;;  %120 = vperm.xlu0 %229, %v117_v11  }
   0x5   :  { %203 = vmatprep.subr.bf16.mxu0 %v254_v3 }
   0x6   :  { %9 = vsyncpa [#allocation4], 0  ;;  %v207_v12 = vpack.c.bf16 %v30_v10, %v29_v9  ;;  %v31_v13 = vld [vmem:[%s354_s1 + $0x30] sm:$0xff]  ;;  %v32_v14 = vld [vmem:[%s354_s1 + $0x38] sm:$0xff]  ;;  %s258_s26 = smov [#allocation3]  }
   0x7   :  { %v210_v15 = vpack.c.bf16 %v32_v14, %v31_v13  ;;  %v33_v16 = vld [vmem:[%s354_s1 + $0x40] sm:$0xff]  ;;  %v34_v17 = vld [vmem:[%s354_s1 + $0x48] sm:$0xff]  ;;  %v35_v19 = vld [vmem:[%s354_s1 + $0x50] sm:$0xff]  ;;  %s139_s27 = sshll.u32 %s258_s26, 4  ;;  %s140_s27 = int_to_ptr.vmem [resolvable:$true] %s139_s27 }
   0x8   :  { %205 = vmatpush3.bf16.msra.mxu0 %v204_v8  ;;  %v213_v18 = vpack.c.bf16 %v34_v17, %v33_v16  ;;  %v36_v20 = vld [vmem:[%s354_s1 + $0x58] sm:$0xff]  ;;  %v37_v22 = vld [vmem:[%s354_s1 + $0x60] sm:$0xff]  ;;  %v38_v23 = vld [vmem:[%s354_s1 + $0x68] sm:$0xff]  ;;  %p235_p1 = scmp.lt.s32.totalorder %s140_s27, %s140_s27 }
   0x9   :  { %206 = vmatprep.subr.bf16.mxu0 %v254_v3  ;;  %v216_v21 = vpack.c.bf16 %v36_v20, %v35_v19  ;;  %v219_v24 = vpack.c.bf16 %v38_v23, %v37_v22  ;;  %v39_v25 = vld [vmem:[%s354_s1 + $0x70] sm:$0xff]  ;;  %v40_v26 = vld [vmem:[%s354_s1 + $0x78] sm:$0xff]  ;;  %v24_v28 = vld [vmem:[%s353_s0] sm:$0xff]  ;;  %s230_s1 = scalar_lea.vmem %s140_s27, 128 }
   0xa   :  { %v222_v27 = vpack.c.bf16 %v40_v26, %v39_v25  ;;  %v147_v31 = vld [vmem:[%s356_s3] ss:$0 sm:$0xff]  ;;  %p231_p0 = scmp.ne.s32.totalorder %s140_s27, %s230_s1  ;;  %p236_p2 = scmp.lt.s32.totalorder %s230_s1, %s230_s1 }
   0xc   :  { %208 = vmatpush3.bf16.msra.mxu0 %v207_v12  ;;  %p237_p3 = por %p236_p2, %p235_p1 }
   0xd   :  { %209 = vmatprep.subr.bf16.mxu0 %v254_v3 }
   0xe   :  { %p238_p4 = pnand %p237_p3, %p231_p0 }
  0x10   :  { %211 = vmatpush3.bf16.msra.mxu0 %v210_v15 }
  0x11   :  { %212 = vmatprep.subr.bf16.mxu0 %v254_v3 }
  0x14   :  { %214 = vmatpush3.bf16.msra.mxu0 %v213_v18 }
  0x15   :  { %215 = vmatprep.subr.bf16.mxu0 %v254_v3 }
  0x18   :  { %217 = vmatpush3.bf16.msra.mxu0 %v216_v21 }
  0x19   :  { %218 = vmatprep.subr.bf16.mxu0 %v254_v3 }
  0x1c   :  { %220 = vmatpush3.bf16.msra.mxu0 %v219_v24 }
  0x1d   :  { %221 = vmatprep.subr.bf16.mxu0 %v254_v3 }
  0x20   :  { %223 = vmatpush3.bf16.msra.mxu0 %v222_v27 }
  0x23   :  { %198 = vmatmul.mubr.f32.vlgmr.msra.gmra.mrb[0].mxu0 %v24_v28 }
  0x83   :  { %v121_v29 = vpop.permute.xlu0 %120 }
  0xf6   :  { %v107_v30 = vpop.f32.mrb[0].mxu0 }
  0xf7   :  { %v123_v32 = vmul.f32 %v121_v29, %v107_v30  ;;  %v199_v33 = vpop.f32.mrb[1].mxu0 }
  0xf9   :  { %v131_v34 = vmul.f32 %v147_v31, %v123_v32 }
  0xfb   :  { %132 = vst [vmem:[#allocation3] sm:$0xff] %v131_v34 }
  0xfc   :  { %241 = shalt.err (!%p238_p4)
}
  0xfd   :  { %s242_s29 = scalar_lea.hbm %s357_s4, 128 }
  0xfe   :  { %p243_p5 = scmp.ne.s32.totalorder %s357_s4, %s242_s29  ;;  %p246_p6 = scmp.lt.u32.totalorder %s242_s29, %s357_s4 }
 0x100   :  { %p248_p7 = pnand %p246_p6, %p243_p5 }
 0x102   :  { %251 = shalt.err (!%p248_p7)
}
 0x103   :  { %142 = dma.vmem_to_hbm [thread:$0]  %s140_s27, 128, %s357_s4, [#allocation4]  }
 0x104   :  { %252 = dma.done.wait [#allocation4], 128  }
 0x105   :  { %253 = vsyncadd [#allocation4], 4294967168 }
 0x106   :  { %146 = vsyncpa [#allocation4], 1 }

</bundles_post_ra>
